<compile_context>
chip_gen: v5e
topology: v5e:2x2
jax: 0.10.0
libtpu: 0.0.40
codegen_flags: <defaults>
</compile_context>

<pallas_src>
import functools

import jax
import jax.numpy as jnp
from jax import lax
from jax.experimental import pallas as pl
from jax.experimental.pallas import tpu as pltpu


def conv_bn_kernel(x_ref, w_ref, p_ref, out_ref, cols_ref, *, kernel, eps):
    """One C_out block: (hoisted) im2col -> matmul -> bias+ReLU -> BatchNorm.

    x_ref   : (N, C_in, L)        bf16  full input, resident across grid steps
    w_ref   : (bc, K*C_in)        bf16  weight block, columns ordered k*C_in + c
    p_ref   : (bc, 3)             f32   packed [conv bias, BN gamma, BN beta]
    out_ref : (bc, N*L_out)       f32   output block (channel-major, flattened)
    cols_ref: (K*C_in, N*L_out)   bf16  VMEM scratch: im2col of x (built once)
    """
    N, C_in, L = x_ref.shape
    kc, NL = cols_ref.shape
    pad = kernel // 2
    L_out = L + 2 * pad - kernel + 1

    # ---- im2col with replicate ('edge') padding, built once per core --------
    @pl.when(pl.program_id(1) == 0)
    def _build_cols():
        x = x_ref[...]  # (N, C_in, L) bf16
        for k in range(kernel):
            start = k - pad
            lo = max(start, 0)
            hi = min(start + L_out, L)
            lk = lo - start                    # left-edge replicate count
            rk = (start + L_out) - hi          # right-edge replicate count
            r0 = k * C_in
            for n in range(N):
                c0 = n * L_out
                cols_ref[r0:r0 + C_in, c0 + lk:c0 + lk + (hi - lo)] = x[n, :, lo:hi]
                if lk > 0:
                    cols_ref[r0:r0 + C_in, c0:c0 + lk] = jnp.broadcast_to(
                        x[n, :, lo:lo + 1], (C_in, lk))
                if rk > 0:
                    cols_ref[r0:r0 + C_in, c0 + lk + (hi - lo):c0 + L_out] = (
                        jnp.broadcast_to(x[n, :, hi - 1:hi], (C_in, rk)))

    # ---- single lane-dense MXU contraction (bf16 in, f32 accumulate) --------
    acc = lax.dot_general(
        w_ref[...], cols_ref[...],
        dimension_numbers=(((1,), (0,)), ((), ())),
        preferred_element_type=jnp.float32)            # (bc, N*L_out) f32

    p = p_ref[...]                                     # (bc, 3) f32
    bias = p[:, 0:1]
    gamma = p[:, 1:2]
    beta = p[:, 2:3]

    # ---- conv bias + ReLU ----
    y = jnp.maximum(acc + bias, 0.0)                   # (bc, N*L_out) f32

    # ---- BatchNorm1d (training mode, batch stats, biased var), one pass -----
    inv_cnt = 1.0 / float(NL)
    s1 = jnp.sum(y, axis=1, keepdims=True)             # (bc, 1)
    s2 = jnp.sum(y * y, axis=1, keepdims=True)         # (bc, 1)
    mean = s1 * inv_cnt
    var = jnp.maximum(s2 * inv_cnt - mean * mean, 0.0)  # guard f32 cancellation
    scale = gamma * lax.rsqrt(var + eps)
    offset = beta - mean * scale                       # per-channel scalar math
    out_ref[...] = (y * scale + offset).astype(out_ref.dtype)


def _pick_cout_block(c_out, max_block=128):
    """C_out block: largest divisor <= max_block (multiple of 8 if partial)."""
    if c_out <= max_block:
        bc = c_out
    else:
        bc = None
        for b in range(max_block, 7, -1):
            if b % 8 == 0 and c_out % b == 0:
                bc = b
                break
        if bc is None:
            bc = c_out  # TODO(synk): awkward C_out with no /8 divisor <= 128
    # Give the (parallel) grid axis >= 2 steps when the split stays 8-aligned,
    # so both v7x TensorCores get work.
    if c_out // bc < 2 and bc % 16 == 0:
        bc //= 2
    return bc


def _vmem_budget_bytes():
    """Per-generation VMEM budget with headroom; conservative fallback."""
    try:
        info = pltpu.get_tpu_info()
        phys = getattr(info, "vmem_capacity_bytes", None)
        if phys:
            return int(phys) * 3 // 4   # ~48 MiB on v7x, ~96 MiB on v5e/v6e
    except Exception:
        pass
    return 48 << 20


def conv_bn_forward(x, weight, bias, gamma, beta, *, kernel, eps=1e-5):
    """x: (N, C_in, L) f32; weight: (C_out, C_in, K); bias/gamma/beta: (C_out,)."""
    N, C_in, L = x.shape
    C_out = weight.shape[0]
    K = kernel
    pad = K // 2
    L_out = L + 2 * pad - K + 1
    kc = K * C_in
    NL = N * L_out

    bc = _pick_cout_block(C_out)
    assert C_out % bc == 0
    n_blocks = C_out // bc
    n_par = 2 if (n_blocks % 2 == 0 and n_blocks >= 2) else 1
    n_seq = n_blocks // n_par

    # ---- wrapper-side layout plumbing (outside the kernel) ----
    xb = x.astype(jnp.bfloat16)
    # weight (C_out, C_in, K) -> (C_out, K*C_in), column order k*C_in + c,
    # matching the im2col row packing inside the kernel.
    w2 = jnp.transpose(weight, (0, 2, 1)).reshape(C_out, kc).astype(jnp.bfloat16)
    params = jnp.stack([bias.astype(jnp.float32),
                        gamma.astype(jnp.float32),
                        beta.astype(jnp.float32)], axis=1)      # (C_out, 3)

    # VMEM estimate (double-buffered blocks + single-copy scratch) + headroom.
    est = (2 * N * C_in * L * 2      # x (bf16, double-buffered)
           + 2 * bc * kc * 2         # weight block (bf16)
           + 2 * bc * 128 * 4        # packed params block (lane-padded)
           + 2 * bc * NL * 4         # output block (f32)
           + kc * NL * 2)            # im2col scratch (bf16, one copy)
    vmem_limit = int(min(max(2 * est, 16 << 20), _vmem_budget_bytes()))

    kern = functools.partial(conv_bn_kernel, kernel=K, eps=eps)

    def _blk(i, j):
        return i * n_seq + j

    out2d = pl.pallas_call(
        kern,
        out_shape=jax.ShapeDtypeStruct((C_out, NL), jnp.float32),
        grid_spec=pltpu.PrefetchScalarGridSpec(
            num_scalar_prefetch=0,
            grid=(n_par, n_seq),
            in_specs=[
                pl.BlockSpec((N, C_in, L), lambda i, j: (0, 0, 0)),    # x resident
                pl.BlockSpec((bc, kc), lambda i, j: (_blk(i, j), 0)),  # weight
                pl.BlockSpec((bc, 3), lambda i, j: (_blk(i, j), 0)),   # b/gamma/beta
            ],
            out_specs=pl.BlockSpec((bc, NL), lambda i, j: (_blk(i, j), 0)),
            scratch_shapes=[pltpu.VMEM((kc, NL), jnp.bfloat16)],
        ),
        compiler_params=pltpu.CompilerParams(
            dimension_semantics=("parallel", "arbitrary"),
            vmem_limit_bytes=vmem_limit,
        ),
    )(xb, w2, params)

    # (C_out, N*L_out) -> (N, C_out, L_out): layout plumbing in XLA, not in-kernel.
    return jnp.transpose(out2d.reshape(C_out, N, L_out), (1, 0, 2))


if __name__ == "__main__":
    # Small shapes consistent with the module: batch=2, input_dim=4,
    # output_dim=8, seq length=16, kernel=3 (odd -> output length preserved).
    N, C_in, C_out, L, K = 2, 4, 8, 16, 3

    key = jax.random.PRNGKey(0)
    k1, k2, k3, k4, k5 = jax.random.split(key, 5)
    fan_in = C_in * K
    bound = 1.0 / (fan_in ** 0.5)

    x = jax.random.normal(k1, (N, C_in, L), jnp.float32)
    weight = jax.random.uniform(k2, (C_out, C_in, K), jnp.float32, -bound, bound)
    bias = jax.random.uniform(k3, (C_out,), jnp.float32, -bound, bound)
    gamma = 1.0 + 0.1 * jax.random.normal(k4, (C_out,), jnp.float32)
    beta = 0.1 * jax.random.normal(k5, (C_out,), jnp.float32)

    out = conv_bn_forward(x, weight, bias, gamma, beta, kernel=K)
    out = jax.block_until_ready(out)

    # Pure-JAX reference (replicate pad -> conv with bf16-rounded inputs and
    # f32 accumulation -> ReLU -> BatchNorm training-mode batch stats).
    pad = K // 2
    xpad = jnp.pad(x, ((0, 0), (0, 0), (pad, pad)), mode="edge")
    conv = lax.conv_general_dilated(
        xpad.astype(jnp.bfloat16), weight.astype(jnp.bfloat16),
        window_strides=(1,), padding="VALID",
        dimension_numbers=("NCH", "OIH", "NCH"),
        preferred_element_type=jnp.float32)
    y = jnp.maximum(conv + bias[None, :, None], 0.0)
    mean = jnp.mean(y, axis=(0, 2), keepdims=True)
    var = jnp.mean((y - mean) ** 2, axis=(0, 2), keepdims=True)
    ref = (gamma[None, :, None] * (y - mean) / jnp.sqrt(var + 1e-5)
           + beta[None, :, None])

    assert out.shape == (N, C_out, L), out.shape
    err = float(jnp.max(jnp.abs(out - ref)))
    assert jnp.allclose(out, ref, atol=1e-3, rtol=1e-3), err
    print("KERNEL_OK")
</pallas_src>

<mosaic_0001>
module attributes {stable_mosaic.version = 11 : i64} {
  func.func @conv_bn_kernel(%arg0: i32, %arg1: i32, %arg2: memref<2x4x16xbf16, #tpu.memory_space<vmem>>, %arg3: memref<8x12xbf16, #tpu.memory_space<vmem>>, %arg4: memref<8x3xf32, #tpu.memory_space<vmem>>, %arg5: memref<8x32xf32, #tpu.memory_space<vmem>>, %arg6: memref<12x32xbf16, #tpu.memory_space<vmem>>) attributes {dimension_semantics = [#tpu.dimension_semantics<parallel>, #tpu.dimension_semantics<arbitrary>], iteration_bounds = array<i64: 1, 1>, scalar_prefetch = 0 : i64, scratch_operands = 1 : i64, tpu.core_type = #tpu.core_type<tc>, window_params = [{pipeline_mode = #tpu.pipeline_mode<synchronous>, transform_indices = @transform_0, window_bounds = array<i64: 2, 4, 16>}, {transform_indices = @transform_1, window_bounds = array<i64: 8, 12>}, {transform_indices = @transform_2, window_bounds = array<i64: 8, 3>}, {transform_indices = @transform_3, window_bounds = array<i64: 8, 32>}]} {
    %c0_i32 = arith.constant 0 : i32
    %0 = arith.cmpi eq, %arg1, %c0_i32 : i32
    %1 = arith.extui %0 : i1 to i32
    %c0_i32_0 = arith.constant 0 : i32
    %2 = arith.cmpi ne, %1, %c0_i32_0 : i32
    scf.if %2 {
      %c0_15 = arith.constant 0 : index
      %c0_16 = arith.constant 0 : index
      %c0_17 = arith.constant 0 : index
      %38 = vector.load %arg2[%c0_15, %c0_16, %c0_17] : memref<2x4x16xbf16, #tpu.memory_space<vmem>>, vector<2x4x16xbf16>
      %39 = vector.extract_strided_slice %38 {offsets = [0, 0, 0], sizes = [1, 4, 15], strides = [1, 1, 1]} : vector<2x4x16xbf16> to vector<1x4x15xbf16>
      %40 = vector.shape_cast %39 : vector<1x4x15xbf16> to vector<4x15xbf16>
      %c0_18 = arith.constant 0 : index
      %c1 = arith.constant 1 : index
      %41 = vector.load %arg6[%c0_18, %c1] : memref<12x32xbf16, #tpu.memory_space<vmem>>, vector<4x15xbf16>
      tpu.vector_store %arg6[%c0_18, %c1], %40 {strides = array<i32>} : memref<12x32xbf16, #tpu.memory_space<vmem>>, vector<4x15xbf16>,
      %42 = vector.extract_strided_slice %38 {offsets = [0, 0, 0], sizes = [1, 4, 1], strides = [1, 1, 1]} : vector<2x4x16xbf16> to vector<1x4x1xbf16>
      %43 = vector.shape_cast %42 : vector<1x4x1xbf16> to vector<4x1xbf16>
      %c0_19 = arith.constant 0 : index
      %c0_20 = arith.constant 0 : index
      %44 = vector.load %arg6[%c0_19, %c0_20] : memref<12x32xbf16, #tpu.memory_space<vmem>>, vector<4x1xbf16>
      tpu.vector_store %arg6[%c0_19, %c0_20], %43 {strides = array<i32>} : memref<12x32xbf16, #tpu.memory_space<vmem>>, vector<4x1xbf16>,
      %45 = vector.extract_strided_slice %38 {offsets = [1, 0, 0], sizes = [1, 4, 15], strides = [1, 1, 1]} : vector<2x4x16xbf16> to vector<1x4x15xbf16>
      %46 = vector.shape_cast %45 : vector<1x4x15xbf16> to vector<4x15xbf16>
      %c0_21 = arith.constant 0 : index
      %c17 = arith.constant 17 : index
      %47 = vector.load %arg6[%c0_21, %c17] : memref<12x32xbf16, #tpu.memory_space<vmem>>, vector<4x15xbf16>
      tpu.vector_store %arg6[%c0_21, %c17], %46 {strides = array<i32>} : memref<12x32xbf16, #tpu.memory_space<vmem>>, vector<4x15xbf16>,
      %48 = vector.extract_strided_slice %38 {offsets = [1, 0, 0], sizes = [1, 4, 1], strides = [1, 1, 1]} : vector<2x4x16xbf16> to vector<1x4x1xbf16>
      %49 = vector.shape_cast %48 : vector<1x4x1xbf16> to vector<4x1xbf16>
      %c0_22 = arith.constant 0 : index
      %c16 = arith.constant 16 : index
      %50 = vector.load %arg6[%c0_22, %c16] : memref<12x32xbf16, #tpu.memory_space<vmem>>, vector<4x1xbf16>
      tpu.vector_store %arg6[%c0_22, %c16], %49 {strides = array<i32>} : memref<12x32xbf16, #tpu.memory_space<vmem>>, vector<4x1xbf16>,
      %51 = vector.extract_strided_slice %38 {offsets = [0, 0, 0], sizes = [1, 4, 16], strides = [1, 1, 1]} : vector<2x4x16xbf16> to vector<1x4x16xbf16>
      %52 = vector.shape_cast %51 : vector<1x4x16xbf16> to vector<4x16xbf16>
      %c4 = arith.constant 4 : index
      %c0_23 = arith.constant 0 : index
      %53 = vector.load %arg6[%c4, %c0_23] : memref<12x32xbf16, #tpu.memory_space<vmem>>, vector<4x16xbf16>
      tpu.vector_store %arg6[%c4, %c0_23], %52 {strides = array<i32>} : memref<12x32xbf16, #tpu.memory_space<vmem>>, vector<4x16xbf16>,
      %54 = vector.extract_strided_slice %38 {offsets = [1, 0, 0], sizes = [1, 4, 16], strides = [1, 1, 1]} : vector<2x4x16xbf16> to vector<1x4x16xbf16>
      %55 = vector.shape_cast %54 : vector<1x4x16xbf16> to vector<4x16xbf16>
      %c4_24 = arith.constant 4 : index
      %c16_25 = arith.constant 16 : index
      %56 = vector.load %arg6[%c4_24, %c16_25] : memref<12x32xbf16, #tpu.memory_space<vmem>>, vector<4x16xbf16>
      tpu.vector_store %arg6[%c4_24, %c16_25], %55 {strides = array<i32>} : memref<12x32xbf16, #tpu.memory_space<vmem>>, vector<4x16xbf16>,
      %57 = vector.extract_strided_slice %38 {offsets = [0, 0, 1], sizes = [1, 4, 15], strides = [1, 1, 1]} : vector<2x4x16xbf16> to vector<1x4x15xbf16>
      %58 = vector.shape_cast %57 : vector<1x4x15xbf16> to vector<4x15xbf16>
      %c8 = arith.constant 8 : index
      %c0_26 = arith.constant 0 : index
      %59 = vector.load %arg6[%c8, %c0_26] : memref<12x32xbf16, #tpu.memory_space<vmem>>, vector<4x15xbf16>
      tpu.vector_store %arg6[%c8, %c0_26], %58 {strides = array<i32>} : memref<12x32xbf16, #tpu.memory_space<vmem>>, vector<4x15xbf16>,
      %60 = vector.extract_strided_slice %38 {offsets = [0, 0, 15], sizes = [1, 4, 1], strides = [1, 1, 1]} : vector<2x4x16xbf16> to vector<1x4x1xbf16>
      %61 = vector.shape_cast %60 : vector<1x4x1xbf16> to vector<4x1xbf16>
      %c8_27 = arith.constant 8 : index
      %c15 = arith.constant 15 : index
      %62 = vector.load %arg6[%c8_27, %c15] : memref<12x32xbf16, #tpu.memory_space<vmem>>, vector<4x1xbf16>
      tpu.vector_store %arg6[%c8_27, %c15], %61 {strides = array<i32>} : memref<12x32xbf16, #tpu.memory_space<vmem>>, vector<4x1xbf16>,
      %63 = vector.extract_strided_slice %38 {offsets = [1, 0, 1], sizes = [1, 4, 15], strides = [1, 1, 1]} : vector<2x4x16xbf16> to vector<1x4x15xbf16>
      %64 = vector.shape_cast %63 : vector<1x4x15xbf16> to vector<4x15xbf16>
      %c8_28 = arith.constant 8 : index
      %c16_29 = arith.constant 16 : index
      %65 = vector.load %arg6[%c8_28, %c16_29] : memref<12x32xbf16, #tpu.memory_space<vmem>>, vector<4x15xbf16>
      tpu.vector_store %arg6[%c8_28, %c16_29], %64 {strides = array<i32>} : memref<12x32xbf16, #tpu.memory_space<vmem>>, vector<4x15xbf16>,
      %66 = vector.extract_strided_slice %38 {offsets = [1, 0, 15], sizes = [1, 4, 1], strides = [1, 1, 1]} : vector<2x4x16xbf16> to vector<1x4x1xbf16>
      %67 = vector.shape_cast %66 : vector<1x4x1xbf16> to vector<4x1xbf16>
      %c8_30 = arith.constant 8 : index
      %c31 = arith.constant 31 : index
      %68 = vector.load %arg6[%c8_30, %c31] : memref<12x32xbf16, #tpu.memory_space<vmem>>, vector<4x1xbf16>
      tpu.vector_store %arg6[%c8_30, %c31], %67 {strides = array<i32>} : memref<12x32xbf16, #tpu.memory_space<vmem>>, vector<4x1xbf16>,
    } else {
    }
    %c0 = arith.constant 0 : index
    %c0_1 = arith.constant 0 : index
    %3 = vector.load %arg3[%c0, %c0_1] : memref<8x12xbf16, #tpu.memory_space<vmem>>, vector<8x12xbf16>
    %c0_2 = arith.constant 0 : index
    %c0_3 = arith.constant 0 : index
    %4 = vector.load %arg6[%c0_2, %c0_3] : memref<12x32xbf16, #tpu.memory_space<vmem>>, vector<12x32xbf16>
    %cst = arith.constant dense<0.000000e+00> : vector<8x32xf32>
    %5 = tpu.matmul %3, %4, %cst {dimension_numbers = #tpu.dot_dimension_numbers<[1], [0], [0], [1], [0, 0, 1, 1], [], []>} : vector<8x12xbf16>, vector<12x32xbf16>, vector<8x32xf32> -> vector<8x32xf32>
    %c0_4 = arith.constant 0 : index
    %c0_5 = arith.constant 0 : index
    %6 = vector.load %arg4[%c0_4, %c0_5] : memref<8x3xf32, #tpu.memory_space<vmem>>, vector<8x3xf32>
    %7 = vector.extract_strided_slice %6 {offsets = [0, 0], sizes = [8, 1], strides = [1, 1]} : vector<8x3xf32> to vector<8x1xf32>
    %8 = vector.extract_strided_slice %6 {offsets = [0, 1], sizes = [8, 1], strides = [1, 1]} : vector<8x3xf32> to vector<8x1xf32>
    %9 = vector.extract_strided_slice %6 {offsets = [0, 2], sizes = [8, 1], strides = [1, 1]} : vector<8x3xf32> to vector<8x1xf32>
    %10 = vector.broadcast %7 : vector<8x1xf32> to vector<8x32xf32>
    %11 = arith.addf %5, %10 : vector<8x32xf32>
    %cst_6 = arith.constant 0.000000e+00 : f32
    %12 = vector.broadcast %cst_6 : f32 to vector<8x32xf32>
    %13 = arith.maximumf %11, %12 : vector<8x32xf32>
    %cst_7 = arith.constant dense<0.000000e+00> : vector<8xf32>
    %14 = vector.multi_reduction <add>, %13, %cst_7 [1] : vector<8x32xf32> to vector<8xf32>
    %15 = vector.shape_cast %14 : vector<8xf32> to vector<8x1xf32>
    %16 = arith.mulf %13, %13 : vector<8x32xf32>
    %cst_8 = arith.constant dense<0.000000e+00> : vector<8xf32>
    %17 = vector.multi_reduction <add>, %16, %cst_8 [1] : vector<8x32xf32> to vector<8xf32>
    %18 = vector.shape_cast %17 : vector<8xf32> to vector<8x1xf32>
    %cst_9 = arith.constant 3.125000e-02 : f32
    %19 = vector.broadcast %cst_9 : f32 to vector<8x1xf32>
    %20 = arith.mulf %15, %19 : vector<8x1xf32>
    %cst_10 = arith.constant 3.125000e-02 : f32
    %21 = vector.broadcast %cst_10 : f32 to vector<8x1xf32>
    %22 = arith.mulf %18, %21 : vector<8x1xf32>
    %23 = arith.mulf %20, %20 : vector<8x1xf32>
    %24 = arith.subf %22, %23 : vector<8x1xf32>
    %cst_11 = arith.constant 0.000000e+00 : f32
    %25 = vector.broadcast %cst_11 : f32 to vector<8x1xf32>
    %26 = arith.maximumf %24, %25 : vector<8x1xf32>
    %cst_12 = arith.constant 9.99999974E-6 : f32
    %27 = vector.broadcast %cst_12 : f32 to vector<8x1xf32>
    %28 = arith.addf %26, %27 : vector<8x1xf32>
    %29 = math.rsqrt %28 : vector<8x1xf32>
    %30 = arith.mulf %8, %29 : vector<8x1xf32>
    %31 = arith.mulf %20, %30 : vector<8x1xf32>
    %32 = arith.subf %9, %31 : vector<8x1xf32>
    %33 = vector.broadcast %30 : vector<8x1xf32> to vector<8x32xf32>
    %34 = arith.mulf %13, %33 : vector<8x32xf32>
    %35 = vector.broadcast %32 : vector<8x1xf32> to vector<8x32xf32>
    %36 = arith.addf %34, %35 : vector<8x32xf32>
    %c0_13 = arith.constant 0 : index
    %c0_14 = arith.constant 0 : index
    %37 = vector.load %arg5[%c0_13, %c0_14] : memref<8x32xf32, #tpu.memory_space<vmem>>, vector<8x32xf32>
    tpu.vector_store %arg5[%c0_13, %c0_14], %36 {strides = array<i32>} : memref<8x32xf32, #tpu.memory_space<vmem>>, vector<8x32xf32>,
    return
  }
  func.func @transform_0(%arg0: i32, %arg1: i32) -> (i32, i32, i32) {
    %c0_i32 = arith.constant 0 : i32
    %c0_i32_0 = arith.constant 0 : i32
    %c0_i32_1 = arith.constant 0 : i32
    %c0_i32_2 = arith.constant 0 : i32
    return %c0_i32, %c0_i32_0, %c0_i32_1 : i32, i32, i32
  }
  func.func @transform_1(%arg0: i32, %arg1: i32) -> (i32, i32) {
    %c1_i32 = arith.constant 1 : i32
    %0 = arith.muli %arg0, %c1_i32 : i32
    %1 = arith.addi %0, %arg1 : i32
    %c0_i32 = arith.constant 0 : i32
    %c0_i32_0 = arith.constant 0 : i32
    return %1, %c0_i32 : i32, i32
  }
  func.func @transform_2(%arg0: i32, %arg1: i32) -> (i32, i32) {
    %c1_i32 = arith.constant 1 : i32
    %0 = arith.muli %arg0, %c1_i32 : i32
    %1 = arith.addi %0, %arg1 : i32
    %c0_i32 = arith.constant 0 : i32
    %c0_i32_0 = arith.constant 0 : i32
    return %1, %c0_i32 : i32, i32
  }
  func.func @transform_3(%arg0: i32, %arg1: i32) -> (i32, i32) {
    %c1_i32 = arith.constant 1 : i32
    %0 = arith.muli %arg0, %c1_i32 : i32
    %1 = arith.addi %0, %arg1 : i32
    %c0_i32 = arith.constant 0 : i32
    %c0_i32_0 = arith.constant 0 : i32
    return %1, %c0_i32 : i32, i32
  }
}

</mosaic_0001>

<bundles_post_ra>
// kernel: tpu_custom_call.1
= control target key start
LH: loop header
LB: loop body
LE: loop exit
PB: predicated region body
PF: predicated region fallthrough
CT: control target
= control target key end

     0   :  { %s338_s0 = inlined_call_operand.vmem [shape: bf16[2,4,16], index: 0, kind: input, shape index: {}]   ;;  %s339_s1 = inlined_call_operand.vmem [shape: bf16[8,12], index: 1, kind: input, shape index: {}]   ;;  %s340_s2 = inlined_call_operand.vmem [shape: f32[8,3], index: 2, kind: input, shape index: {}]   ;;  %s341_s3 = inlined_call_operand.hbm [shape: f32[8,32], index: 3, kind: output, shape index: {}]  }
   0x1   :  { %v55_v0 = vld [vmem:[%s338_s0] sm:$0x3] }
   0x2   :  { %58 = vst [vmem:[#allocation1] ss:$2 sm:$0xff] %v55_v0 }
   0x3   :  { %8 = vsyncpa [#allocation4], 0  ;;  %v56_v1 = vld [vmem:[%s338_s0 + $0x2] sm:$0x3]  ;;  %s284_s16 = smov 1   ;;  %s285_s17 = smov 17  }
   0x4   :  { %s286_s18 = smov 16   ;;  %s287_s0 = smov 127   ;;  %vm89_vm0 = vcmask 125954   ;;  %vm64_vm1 = vcmask 123912   ;;  %vm66_vm2 = vcmask 1024   ;;  %vm75_vm3 = vcmask 255112  }
   0x5   :  { %s288_s19 = smov 15   ;;  %vm83_vm4 = vcmask 132224   ;;  %vm98_vm5 = vcmask 257154   ;;  %vm106_vm6 = vcmask 115712   ;;  %vm108_vm7 = vcmask 124024   ;;  %v323_v14 = vld [vmem:[%s340_s2] sm:$0xff] }
   0x6   :  { %v289_v16 = vmov 0   ;;  %vm116_vm8 = vcmask 246912   ;;  %vm124_vm9 = vcmask 255224   ;;  %vm144_vm10 = vcmask 1045504   ;;  %v126_v23 = vld [vmem:[%s339_s1] sm:$0xf] }
   0x7   :  { %252 = vset.pattern.permute.xlu1 %v289_v16  ;;  %vm140_vm11 = vcmask 97280   ;;  %vm162_vm12 = vcmask 261120   ;;  %v290_v35 = vmov 1   ;;  %v291_v50 = vmov 2   ;;  %s292_s1 = smov [#allocation3]   ;;  %s216_s26 = sshll.u32 %s341_s3, 4  ;;  %s217_s26 = int_to_ptr.hbm [resolvable:$true] %s216_s26 }
   0x8   :  { %255 = vset.pattern.permute.xlu0 %v291_v50  ;;  %s214_s23 = sshll.u32 %s292_s1, 4  ;;  %s215_s23 = int_to_ptr.vmem [resolvable:$true] %s214_s23 }
   0x9   :  { %v59_v2 = vld.sshfl [vmem:[#allocation1] sm:$0xff pattern:$0x75643120] }
   0xa   :  { %61 = vrot.lane.b32.xlu0 %v59_v2, %s284_s16  ;;  %69 = vst [vmem:[#allocation1] ss:$2 sm:$0xff] %v56_v1 }
  0x11   :  { %v70_v3 = vld.sshfl [vmem:[#allocation1] sm:$0xff pattern:$0x75643120] }
  0x12   :  { %72 = vrot.lane.b32.xlu1 %v70_v3, %s285_s17  ;;  %77 = vst [vmem:[#allocation1] ss:$2 sm:$0xff] %v56_v1 }
  0x19   :  { %v78_v4 = vld.sshfl [vmem:[#allocation1] sm:$0xff pattern:$0x75643120] }
  0x1a   :  { %86 = vst [vmem:[#allocation1 + $0x1] ss:$2 sm:$0xff] %v55_v0  ;;  %80 = vrot.lane.b32.xlu2 %v78_v4, %s286_s18 }
  0x21   :  { %v87_v5 = vld.sshfl [vmem:[#allocation1] sm:$0xff pattern:$0x75643120] }
  0x22   :  { %92 = vst [vmem:[#allocation1 + $0x1] ss:$2 sm:$0xff] %v56_v1 }
  0x23   :  { %90 = vst.msk [vmem:[#allocation2] sm:$0xc] %vm89_vm0, %v87_v5 }
  0x29   :  { %v93_v6 = vld.sshfl [vmem:[#allocation1] sm:$0xff pattern:$0x75643120] }
  0x2a   :  { %100 = vst [vmem:[#allocation1] ss:$2 sm:$0xff] %v55_v0  ;;  %95 = vrot.lane.b32.xlu2 %v93_v6, %s286_s18 }
  0x31   :  { %v101_v7 = vld.sshfl [vmem:[#allocation1] sm:$0xff pattern:$0x75643120] }
  0x32   :  { %103 = vrot.lane.b32.xlu0 %v101_v7, %s287_s0  ;;  %110 = vst [vmem:[#allocation1] ss:$2 sm:$0xff] %v56_v1 }
  0x39   :  { %v111_v8 = vld.sshfl [vmem:[#allocation1] sm:$0xff pattern:$0x75643120] }
  0x3a   :  { %113 = vrot.lane.b32.xlu1 %v111_v8, %s288_s19  ;;  %118 = vst [vmem:[#allocation1] ss:$2 sm:$0xff] %v56_v1 }
  0x41   :  { %v119_v9 = vld.sshfl [vmem:[#allocation1] sm:$0xff pattern:$0x75643120] }
  0x42   :  { %121 = vrot.lane.b32.xlu0 %v119_v9, %s286_s18  ;;  %132 = vperm.xlu1 %252, %v323_v14  }
  0x4a   :  { %253 = vset.pattern.permute.xlu1 %v290_v35 }
  0x74   :  { %v81_v10 = vpop.permute.xlu2 %80 }
  0x7c   :  { %v62_v11 = vpop.permute.xlu0 %61 }
  0x7d   :  { %65 = vst.msk [vmem:[#allocation2] sm:$0x3] %vm64_vm1, %v62_v11 }
  0x7e   :  { %67 = vst.msk [vmem:[#allocation2] sm:$0x3] %vm66_vm2, %v55_v0 }
  0x84   :  { %v73_v12 = vpop.permute.xlu1 %72  ;;  %v96_v13 = vpop.permute.xlu2 %95 }
  0x85   :  { %76 = vst.msk [vmem:[#allocation2] sm:$0x3] %vm75_vm3, %v73_v12 }
  0x86   :  { %84 = vst.msk [vmem:[#allocation2] sm:$0x3] %vm83_vm4, %v81_v10 }
  0x87   :  { %99 = vst.msk [vmem:[#allocation2] sm:$0xc] %vm98_vm5, %v96_v13 }
  0x8e   :  { %v239_v19 = vld [vmem:[#allocation2] sm:$0xf] }
  0xa4   :  { %v104_v15 = vpop.permute.xlu0 %103 }
  0xa5   :  { %107 = vst.msk [vmem:[#allocation2 + $0x4] sm:$0x3] %vm106_vm6, %v104_v15 }
  0xa6   :  { %109 = vst.msk [vmem:[#allocation2 + $0x4] sm:$0x3] %vm108_vm7, %v55_v0 }
  0xac   :  { %v114_v17 = vpop.permute.xlu1 %113 }
  0xad   :  { %117 = vst.msk [vmem:[#allocation2 + $0x4] sm:$0x3] %vm116_vm8, %v114_v17 }
  0xb4   :  { %v122_v18 = vpop.permute.xlu0 %121  ;;  %v133_v24 = vpop.permute.xlu1 %132 }
  0xb5   :  { %125 = vst.msk [vmem:[#allocation2 + $0x4] sm:$0x3] %vm124_vm9, %v122_v18 }
  0xbc   :  { %v242_v20 = vld [vmem:[#allocation2] sm:$0x30] }
  0xbd   :  { %v240_v21 = vor.u32 %v242_v20, %v239_v19 }
  0xbf   :  { %v146_v22 = vsel %vm144_vm10, %v240_v21, 0 }
  0xc0   :  { %155 = vmatpush.bf16.msra.mxu0 %v146_v22 }
  0xc3   :  { %241 = vmatmul.msk.bf16.vlgmr.msra.gmra.mxu0 %vm140_vm11, %v126_v23 }
 0x140   :  { %v157_v25 = vpop.f32.mrf.mxu0 }
 0x141   :  { %v158_v26 = vadd.f32 %v157_v25, %v133_v24 }
 0x143   :  { %v161_v27 = vmax.f32 %v158_v26, 0.0 }
 0x145   :  { %v163_v28 = vsel %vm162_vm12, %v161_v27, 0.0  ;;  %v166_v29 = vmul.f32 %v161_v27, %v161_v27 }
 0x146   :  { %164 = vadd.xlane.f32.xlu2 %v163_v28 }
 0x147   :  { %v167_v30 = vsel %vm162_vm12, %v166_v29, 0.0 }
 0x148   :  { %v159_v31 = vpop.f32.mrf.mxu0  ;;  %168 = vadd.xlane.f32.xlu0 %v167_v30 }
 0x1b9   :  { %v165_v32 = vpop.xlane.xlu2 %164 }
 0x1ba   :  { %v170_v33 = vmul.f32 0.03125, %v165_v32 }
 0x1bb   :  { %v169_v34 = vpop.xlane.xlu0 %168 }
 0x1bc   :  { %v172_v36 = vmul.f32 %v170_v33, %v170_v33  ;;  %v171_v37 = vmul.f32 0.03125, %v169_v34 }
 0x1be   :  { %v173_v38 = vsub.f32 %v171_v37, %v172_v36 }
 0x1c0   :  { %v174_v39 = vmax.f32 %v173_v38, 0.0 }
 0x1c2   :  { %v175_v40 = vadd.f32 1e-05, %v174_v39 }
 0x1c4   :  { %256 = vrsqrt.f32 %v175_v40  ;;  %vm182_vm14 = vweird.f32 %v175_v40 }
 0x1ca   :  { %v257_v41 = vpop.eup %256 }
 0x1cb   :  { %v177_v42 = vmul.f32 %v257_v41, %v175_v40  ;;  %vm183_vm13 = vweird.f32 %v257_v41 }
 0x1cc   :  { %vm184_vm15 = vmor %vm182_vm14, %vm183_vm13 }
 0x1cd   :  { %v178_v43 = vmul.f32 %v257_v41, %v177_v42 }
 0x1cf   :  { %v179_v44 = vmul.f32 0.5, %v178_v43 }
 0x1d1   :  { %v180_v45 = vsub.f32 1.5, %v179_v44 }
 0x1d3   :  { %v181_v46 = vmul.f32 %v257_v41, %v180_v45 }
 0x1d5   :  { %v185_v47 = vsel %vm184_vm15, %v257_v41, %v181_v46 }
 0x1d6   :  { %v186_v48 = vmul.f32 %v185_v47, %v323_v14 }
 0x1d8   :  { %v187_v49 = vmul.f32 %v186_v48, %v170_v33 }
 0x1da   :  { %189 = vrot.lane.b32.xlu1 %v187_v49, %s284_s16 }
 0x1e2   :  { %195 = vperm.xlu1 %253, %v186_v48  }
 0x1ea   :  { %254 = vset.pattern.permute.xlu1 %v291_v50 }
 0x24c   :  { %v190_v51 = vpop.permute.xlu1 %189 }
 0x24d   :  { %v192_v52 = vsub.f32 %v323_v14, %v190_v51 }
 0x24f   :  { %201 = vperm.xlu1 %254, %v192_v52  }
 0x254   :  { %v196_v53 = vpop.permute.xlu1 %195 }
 0x255   :  { %v198_v54 = vmul.f32 %v196_v53, %v161_v27 }
 0x2c1   :  { %v202_v55 = vpop.permute.xlu1 %201 }
 0x2c2   :  { %v204_v56 = vadd.f32 %v202_v55, %v198_v54 }
 0x2c4   :  { %205 = vst.msk [vmem:[#allocation3] sm:$0xff] %vm162_vm12, %v204_v56 }
 0x2c5   :  { %219 = dma.vmem_to_hbm [thread:$0]  %s215_s23, 128, %s217_s26, [#allocation4]  }
 0x2c6   :  { %282 = dma.done.wait [#allocation4], 128  }
 0x2c7   :  { %283 = vsyncadd [#allocation4], 4294967168 }
 0x2c8   :  { %224 = vsyncpa [#allocation4], 1 }

</bundles_post_ra>
